<compile_context>
chip_gen: v7x
topology: tpu7x:2x2x1
jax: 0.10.0
libtpu: 0.0.40
codegen_flags: <defaults>
</compile_context>

<pallas_src>
import jax
import jax.numpy as jnp
from jax import lax
from jax.experimental import pallas as pl
from jax.experimental.pallas import tpu as pltpu


def _make_basic_block_kernel(H, W, NB, Cin, K):
    HW = H * W
    L = NB * HW

    def kernel(x_ref, scale_ref, shift_ref, w_ref, b_ref, mask_ref, out_ref):
        # x_ref:     (Cin, L)    channel-major, NB images side-by-side along lanes
        # scale_ref: (Cin, 1)    folded BN scale = gamma / sqrt(var + eps)
        # shift_ref: (Cin, 1)    folded BN shift = beta - mean * scale
        # w_ref:     (K, 9*Cin)  conv weights, tap-major ((ky,kx) outer, cin inner)
        # b_ref:     (K, 1)
        # mask_ref:  (9, L)      per-tap boundary masks (rows/cols at the image edges)
        # out_ref:   (Cin+K, L)
        x0 = x_ref[...]

        # BatchNorm (folded scale/shift) + ReLU on the VPU.
        a = jnp.maximum(x0 * scale_ref[...] + shift_ref[...], 0.0)

        # 9 shifted, edge-masked windows built in registers via XLU lane rolls.
        # window_t[c, p] = a[c, p + s_t] if (p + s_t) stays inside the same image, else 0.
        windows = []
        for ky in range(3):
            for kx in range(3):
                t = ky * 3 + kx
                s = (ky - 1) * W + (kx - 1)
                if s == 0:
                    win = a                                           # center tap, no mask
                else:
                    win = pltpu.roll(a, shift=(-s) % L, axis=1) * mask_ref[t:t + 1, :]
                windows.append(win)
        rhs = jnp.concatenate(windows, axis=0)                        # (9*Cin, L), vreg-resident

        # Single MXU matmul for all 9 taps: (K, 9*Cin) @ (9*Cin, L).
        conv = jnp.dot(w_ref[...], rhs, preferred_element_type=jnp.float32) + b_ref[...]

        # Channel concat([x, conv]) as ONE aligned full-block store.
        out_ref[...] = jnp.concatenate([x0, conv], axis=0).astype(out_ref.dtype)

    return kernel


def _pick_images_per_step(N):
    """Largest NB dividing N that still leaves >= 2 grid steps (megacore on v7x)."""
    if N <= 1:
        return 1
    best = 1
    for nb in range(1, N + 1):
        if N % nb == 0 and N // nb >= 2:
            best = nb
    return best


def basic_block(x, gamma, beta, w, b, *, eps=1e-5):
    """Forward of BasicBlock. x: (N, Cin, H, W) f32 -> (N, Cin+K, H, W) f32."""
    N, Cin, H, W = x.shape
    K = w.shape[0]
    HW = H * W
    NB = _pick_images_per_step(N)
    L = NB * HW

    xf = x.astype(jnp.float32)

    # Training-mode BatchNorm2d statistics, two-pass form (avoids E[x^2]-E[x]^2 cancellation).
    mean = jnp.mean(xf, axis=(0, 2, 3))                                   # (Cin,)
    var = jnp.mean(jnp.square(xf - mean.reshape(1, Cin, 1, 1)), axis=(0, 2, 3))
    scale = gamma.astype(jnp.float32) * lax.rsqrt(var + eps)              # (Cin,)
    shift = beta.astype(jnp.float32) - mean * scale                       # (Cin,)
    scale2 = scale.reshape(Cin, 1)
    shift2 = shift.reshape(Cin, 1)

    # Conv weights flattened once into the exact matmul operand layout: (K, 9*Cin), tap-major.
    w2 = jnp.transpose(w.astype(jnp.float32), (0, 2, 3, 1)).reshape(K, 9 * Cin)
    b2 = b.astype(jnp.float32).reshape(K, 1)

    # Per-tap boundary masks over one image, tiled across the NB images of a block.
    pos = jnp.arange(HW, dtype=jnp.int32)
    row = pos // W
    col = pos % W
    row_lo = (row >= 1).astype(jnp.float32)
    row_hi = (row <= H - 2).astype(jnp.float32)
    col_lo = (col >= 1).astype(jnp.float32)
    col_hi = (col <= W - 2).astype(jnp.float32)
    tap_masks = []
    for ky in range(3):
        for kx in range(3):
            m = jnp.ones((HW,), jnp.float32)
            if ky == 0:
                m = m * row_lo
            if ky == 2:
                m = m * row_hi
            if kx == 0:
                m = m * col_lo
            if kx == 2:
                m = m * col_hi
            tap_masks.append(m)
    mask9 = jnp.tile(jnp.stack(tap_masks, axis=0), (1, NB))               # (9, L)

    # Channel-major, lane-dense activation layout: (Cin, N*HW), image-major along lanes.
    x_cm = jnp.transpose(xf, (1, 0, 2, 3)).reshape(Cin, N * HW)

    out_cm = pl.pallas_call(
        _make_basic_block_kernel(H, W, NB, Cin, K),
        out_shape=jax.ShapeDtypeStruct((Cin + K, N * HW), jnp.float32),
        grid_spec=pltpu.PrefetchScalarGridSpec(
            num_scalar_prefetch=0,
            grid=(N // NB,),
            in_specs=[
                pl.BlockSpec((Cin, L), lambda i: (0, i)),
                pl.BlockSpec((Cin, 1), lambda i: (0, 0)),
                pl.BlockSpec((Cin, 1), lambda i: (0, 0)),
                pl.BlockSpec((K, 9 * Cin), lambda i: (0, 0)),
                pl.BlockSpec((K, 1), lambda i: (0, 0)),
                pl.BlockSpec((9, L), lambda i: (0, 0)),
            ],
            out_specs=pl.BlockSpec((Cin + K, L), lambda i: (0, i)),
        ),
        compiler_params=pltpu.CompilerParams(
            dimension_semantics=("parallel",)),
    )(x_cm, scale2, shift2, w2, b2, mask9)

    return jnp.transpose(out_cm.reshape(Cin + K, N, H, W), (1, 0, 2, 3))


def _reference(x, gamma, beta, w, b, eps=1e-5):
    N, Cin, H, W = x.shape
    mean = jnp.mean(x, axis=(0, 2, 3)).reshape(1, Cin, 1, 1)
    var = jnp.mean((x - mean) ** 2, axis=(0, 2, 3)).reshape(1, Cin, 1, 1)
    a = (x - mean) * lax.rsqrt(var + eps) * gamma.reshape(1, Cin, 1, 1) + beta.reshape(1, Cin, 1, 1)
    a = jnp.maximum(a, 0.0)
    conv = lax.conv_general_dilated(
        a, w, window_strides=(1, 1), padding=((1, 1), (1, 1)),
        dimension_numbers=("NCHW", "OIHW", "NCHW"))
    conv = conv + b.reshape(1, -1, 1, 1)
    return jnp.concatenate([x, conv], axis=1)


if __name__ == "__main__":
    key = jax.random.PRNGKey(0)
    N, Cin, H, W, K = 2, 4, 16, 16, 12

    k_x, k_w, k_b, k_g, k_beta = jax.random.split(key, 5)
    x = jax.random.normal(k_x, (N, Cin, H, W), jnp.float32)
    w = jax.random.normal(k_w, (K, Cin, 3, 3), jnp.float32) * 0.1    # Conv2d weight (OIHW)
    b = jax.random.normal(k_b, (K,), jnp.float32) * 0.1              # Conv2d bias
    gamma = 1.0 + 0.1 * jax.random.normal(k_g, (Cin,), jnp.float32)  # BN weight
    beta = 0.1 * jax.random.normal(k_beta, (Cin,), jnp.float32)      # BN bias

    out = basic_block(x, gamma, beta, w, b)
    out = jax.block_until_ready(out)

    ref = _reference(x, gamma, beta, w, b)
    assert out.shape == (N, Cin + K, H, W), out.shape
    err = float(jnp.max(jnp.abs(out - ref)))
    assert jnp.allclose(out, ref, atol=1e-3, rtol=1e-3), err
    print("KERNEL_OK")
</pallas_src>

<mosaic_0001>
module attributes {stable_mosaic.version = 11 : i64} {
  func.func @kernel(%arg0: i32, %arg1: memref<4x256xf32, #tpu.memory_space<vmem>>, %arg2: memref<4x1xf32, #tpu.memory_space<vmem>>, %arg3: memref<4x1xf32, #tpu.memory_space<vmem>>, %arg4: memref<12x36xf32, #tpu.memory_space<vmem>>, %arg5: memref<12x1xf32, #tpu.memory_space<vmem>>, %arg6: memref<9x256xf32, #tpu.memory_space<vmem>>, %arg7: memref<16x256xf32, #tpu.memory_space<vmem>>) attributes {dimension_semantics = [#tpu.dimension_semantics<parallel>], iteration_bounds = array<i64: 2>, scalar_prefetch = 0 : i64, scratch_operands = 0 : i64, tpu.core_type = #tpu.core_type<tc>, window_params = [{transform_indices = @transform_0, window_bounds = array<i64: 4, 256>}, {pipeline_mode = #tpu.pipeline_mode<synchronous>, transform_indices = @transform_1, window_bounds = array<i64: 4, 1>}, {pipeline_mode = #tpu.pipeline_mode<synchronous>, transform_indices = @transform_2, window_bounds = array<i64: 4, 1>}, {pipeline_mode = #tpu.pipeline_mode<synchronous>, transform_indices = @transform_3, window_bounds = array<i64: 12, 36>}, {pipeline_mode = #tpu.pipeline_mode<synchronous>, transform_indices = @transform_4, window_bounds = array<i64: 12, 1>}, {pipeline_mode = #tpu.pipeline_mode<synchronous>, transform_indices = @transform_5, window_bounds = array<i64: 9, 256>}, {transform_indices = @transform_6, window_bounds = array<i64: 16, 256>}]} {
    %c0 = arith.constant 0 : index
    %c0_0 = arith.constant 0 : index
    %0 = vector.load %arg1[%c0, %c0_0] : memref<4x256xf32, #tpu.memory_space<vmem>>, vector<4x256xf32>
    %c0_1 = arith.constant 0 : index
    %c0_2 = arith.constant 0 : index
    %1 = vector.load %arg2[%c0_1, %c0_2] : memref<4x1xf32, #tpu.memory_space<vmem>>, vector<4x1xf32>
    %2 = vector.broadcast %1 : vector<4x1xf32> to vector<4x256xf32>
    %3 = arith.mulf %0, %2 : vector<4x256xf32>
    %c0_3 = arith.constant 0 : index
    %c0_4 = arith.constant 0 : index
    %4 = vector.load %arg3[%c0_3, %c0_4] : memref<4x1xf32, #tpu.memory_space<vmem>>, vector<4x1xf32>
    %5 = vector.broadcast %4 : vector<4x1xf32> to vector<4x256xf32>
    %6 = arith.addf %3, %5 : vector<4x256xf32>
    %cst = arith.constant 0.000000e+00 : f32
    %7 = vector.broadcast %cst : f32 to vector<4x256xf32>
    %8 = arith.maximumf %6, %7 : vector<4x256xf32>
    %c17_i32 = arith.constant 17 : i32
    %9 = tpu.dynamic_rotate %8 by %c17_i32 dim 1 : vector<4x256xf32>, i32 -> vector<4x256xf32>
    %c0_5 = arith.constant 0 : index
    %c0_6 = arith.constant 0 : index
    %10 = vector.load %arg6[%c0_5, %c0_6] : memref<9x256xf32, #tpu.memory_space<vmem>>, vector<1x256xf32>
    %11 = vector.broadcast %10 : vector<1x256xf32> to vector<4x256xf32>
    %12 = arith.mulf %9, %11 : vector<4x256xf32>
    %c16_i32 = arith.constant 16 : i32
    %13 = tpu.dynamic_rotate %8 by %c16_i32 dim 1 : vector<4x256xf32>, i32 -> vector<4x256xf32>
    %c1 = arith.constant 1 : index
    %c0_7 = arith.constant 0 : index
    %14 = vector.load %arg6[%c1, %c0_7] : memref<9x256xf32, #tpu.memory_space<vmem>>, vector<1x256xf32>
    %15 = vector.broadcast %14 : vector<1x256xf32> to vector<4x256xf32>
    %16 = arith.mulf %13, %15 : vector<4x256xf32>
    %c15_i32 = arith.constant 15 : i32
    %17 = tpu.dynamic_rotate %8 by %c15_i32 dim 1 : vector<4x256xf32>, i32 -> vector<4x256xf32>
    %c2 = arith.constant 2 : index
    %c0_8 = arith.constant 0 : index
    %18 = vector.load %arg6[%c2, %c0_8] : memref<9x256xf32, #tpu.memory_space<vmem>>, vector<1x256xf32>
    %19 = vector.broadcast %18 : vector<1x256xf32> to vector<4x256xf32>
    %20 = arith.mulf %17, %19 : vector<4x256xf32>
    %c1_i32 = arith.constant 1 : i32
    %21 = tpu.dynamic_rotate %8 by %c1_i32 dim 1 : vector<4x256xf32>, i32 -> vector<4x256xf32>
    %c3 = arith.constant 3 : index
    %c0_9 = arith.constant 0 : index
    %22 = vector.load %arg6[%c3, %c0_9] : memref<9x256xf32, #tpu.memory_space<vmem>>, vector<1x256xf32>
    %23 = vector.broadcast %22 : vector<1x256xf32> to vector<4x256xf32>
    %24 = arith.mulf %21, %23 : vector<4x256xf32>
    %c255_i32 = arith.constant 255 : i32
    %25 = tpu.dynamic_rotate %8 by %c255_i32 dim 1 : vector<4x256xf32>, i32 -> vector<4x256xf32>
    %c5 = arith.constant 5 : index
    %c0_10 = arith.constant 0 : index
    %26 = vector.load %arg6[%c5, %c0_10] : memref<9x256xf32, #tpu.memory_space<vmem>>, vector<1x256xf32>
    %27 = vector.broadcast %26 : vector<1x256xf32> to vector<4x256xf32>
    %28 = arith.mulf %25, %27 : vector<4x256xf32>
    %c241_i32 = arith.constant 241 : i32
    %29 = tpu.dynamic_rotate %8 by %c241_i32 dim 1 : vector<4x256xf32>, i32 -> vector<4x256xf32>
    %c6 = arith.constant 6 : index
    %c0_11 = arith.constant 0 : index
    %30 = vector.load %arg6[%c6, %c0_11] : memref<9x256xf32, #tpu.memory_space<vmem>>, vector<1x256xf32>
    %31 = vector.broadcast %30 : vector<1x256xf32> to vector<4x256xf32>
    %32 = arith.mulf %29, %31 : vector<4x256xf32>
    %c240_i32 = arith.constant 240 : i32
    %33 = tpu.dynamic_rotate %8 by %c240_i32 dim 1 : vector<4x256xf32>, i32 -> vector<4x256xf32>
    %c7 = arith.constant 7 : index
    %c0_12 = arith.constant 0 : index
    %34 = vector.load %arg6[%c7, %c0_12] : memref<9x256xf32, #tpu.memory_space<vmem>>, vector<1x256xf32>
    %35 = vector.broadcast %34 : vector<1x256xf32> to vector<4x256xf32>
    %36 = arith.mulf %33, %35 : vector<4x256xf32>
    %c239_i32 = arith.constant 239 : i32
    %37 = tpu.dynamic_rotate %8 by %c239_i32 dim 1 : vector<4x256xf32>, i32 -> vector<4x256xf32>
    %c8 = arith.constant 8 : index
    %c0_13 = arith.constant 0 : index
    %38 = vector.load %arg6[%c8, %c0_13] : memref<9x256xf32, #tpu.memory_space<vmem>>, vector<1x256xf32>
    %39 = vector.broadcast %38 : vector<1x256xf32> to vector<4x256xf32>
    %40 = arith.mulf %37, %39 : vector<4x256xf32>
    %41 = tpu.concatenate %12, %16, %20, %24, %8, %28, %32, %36, %40 in 0 : vector<4x256xf32>, vector<4x256xf32>, vector<4x256xf32>, vector<4x256xf32>, vector<4x256xf32>, vector<4x256xf32>, vector<4x256xf32>, vector<4x256xf32>, vector<4x256xf32> -> vector<36x256xf32>
    %c0_14 = arith.constant 0 : index
    %c0_15 = arith.constant 0 : index
    %42 = vector.load %arg4[%c0_14, %c0_15] : memref<12x36xf32, #tpu.memory_space<vmem>>, vector<12x36xf32>
    %cst_16 = arith.constant dense<0.000000e+00> : vector<12x256xf32>
    %43 = tpu.matmul %42, %41, %cst_16 {dimension_numbers = #tpu.dot_dimension_numbers<[1], [0], [0], [1], [0, 0, 1, 1], [], []>} : vector<12x36xf32>, vector<36x256xf32>, vector<12x256xf32> -> vector<12x256xf32>
    %c0_17 = arith.constant 0 : index
    %c0_18 = arith.constant 0 : index
    %44 = vector.load %arg5[%c0_17, %c0_18] : memref<12x1xf32, #tpu.memory_space<vmem>>, vector<12x1xf32>
    %45 = vector.broadcast %44 : vector<12x1xf32> to vector<12x256xf32>
    %46 = arith.addf %43, %45 : vector<12x256xf32>
    %47 = tpu.concatenate %0, %46 in 0 : vector<4x256xf32>, vector<12x256xf32> -> vector<16x256xf32>
    %c0_19 = arith.constant 0 : index
    %c0_20 = arith.constant 0 : index
    %48 = vector.load %arg7[%c0_19, %c0_20] : memref<16x256xf32, #tpu.memory_space<vmem>>, vector<16x256xf32>
    tpu.vector_store %arg7[%c0_19, %c0_20], %47 {strides = array<i32>} : memref<16x256xf32, #tpu.memory_space<vmem>>, vector<16x256xf32>,
    return
  }
  func.func @transform_0(%arg0: i32) -> (i32, i32) {
    %c0_i32 = arith.constant 0 : i32
    %c0_i32_0 = arith.constant 0 : i32
    return %c0_i32, %arg0 : i32, i32
  }
  func.func @transform_1(%arg0: i32) -> (i32, i32) {
    %c0_i32 = arith.constant 0 : i32
    %c0_i32_0 = arith.constant 0 : i32
    %c0_i32_1 = arith.constant 0 : i32
    return %c0_i32, %c0_i32_0 : i32, i32
  }
  func.func @transform_2(%arg0: i32) -> (i32, i32) {
    %c0_i32 = arith.constant 0 : i32
    %c0_i32_0 = arith.constant 0 : i32
    %c0_i32_1 = arith.constant 0 : i32
    return %c0_i32, %c0_i32_0 : i32, i32
  }
  func.func @transform_3(%arg0: i32) -> (i32, i32) {
    %c0_i32 = arith.constant 0 : i32
    %c0_i32_0 = arith.constant 0 : i32
    %c0_i32_1 = arith.constant 0 : i32
    return %c0_i32, %c0_i32_0 : i32, i32
  }
  func.func @transform_4(%arg0: i32) -> (i32, i32) {
    %c0_i32 = arith.constant 0 : i32
    %c0_i32_0 = arith.constant 0 : i32
    %c0_i32_1 = arith.constant 0 : i32
    return %c0_i32, %c0_i32_0 : i32, i32
  }
  func.func @transform_5(%arg0: i32) -> (i32, i32) {
    %c0_i32 = arith.constant 0 : i32
    %c0_i32_0 = arith.constant 0 : i32
    %c0_i32_1 = arith.constant 0 : i32
    return %c0_i32, %c0_i32_0 : i32, i32
  }
  func.func @transform_6(%arg0: i32) -> (i32, i32) {
    %c0_i32 = arith.constant 0 : i32
    %c0_i32_0 = arith.constant 0 : i32
    return %c0_i32, %arg0 : i32, i32
  }
}

</mosaic_0001>

<bundles_post_ra>
// kernel: tpu_custom_call.1
= control target key start
LH: loop header
LB: loop body
LE: loop exit
PB: predicated region body
PF: predicated region fallthrough
CT: control target
= control target key end

     0   :  { %11 = vsyncpa [#allocation3], 0  ;;  %s1383_s0 = inlined_call_operand.hbm [shape: f32[4,512], index: 0, kind: input, shape index: {}]   ;;  %s1384_s1 = inlined_call_operand.vmem [shape: f32[4,1], index: 1, kind: input, shape index: {}]   ;;  %s1385_s2 = inlined_call_operand.vmem [shape: f32[4,1], index: 2, kind: input, shape index: {}]   ;;  %s1386_s3 = inlined_call_operand.hbm [shape: f32[12,36], index: 3, kind: input, shape index: {}]   ;;  %s1387_s4 = inlined_call_operand.vmem [shape: f32[12,1], index: 4, kind: input, shape index: {}]   ;;  %s1388_s5 = inlined_call_operand.vmem [shape: f32[9,256], index: 5, kind: input, shape index: {}]   ;;  %s1389_s6 = inlined_call_operand.hbm [shape: f32[16,512], index: 6, kind: output, shape index: {}]  }
   0x1   :  { %13 = vsyncpa [#allocation3 + $0x1], 0 }
   0x2   :  { %14 = vsyncpa [#allocation6], 0 }
   0x3   :  { %15 = vsyncpa [#allocation4], 0 }
   0x4   :  { %17 = vsyncpa [#allocation4 + $0x1], 0  ;;  %s1053_s21 = smov 0   ;;  %s1055_s22 = smov 0  }
   0x5   :  { %s1057_s23 = smov 0   ;;  %s1059_s24 = smov 0  }
   0x6 LB: > { %s1074_s25 = sadd.s32 4294967295, %s998_s24   ;;  %s752_s26 = sadd.s32 4294967294, %s998_s24   ;;  %s998_s24 = sphi %s1059_s24, %s1409_s24   ;;  %s994_s23 = sphi %s1057_s23, %s1408_s23   ;;  %s990_s22 = sphi %s1055_s22, %s1407_s22   ;;  %s986_s21 = sphi %s1053_s21, %s1406_s21  }
   0x7   : > { %p43_p0 = scmp.ne.s32.totalorder %s990_s22, %s986_s21  ;;  %p1390_p1 = scmp.eq.s32.totalorder %s1074_s25, 0 }
   0x8   : > { %p178_p3 = scmp.eq.s32.totalorder %s752_s26, 1  ;;  %p753_p5 = scmp.ge.s32.totalorder %s998_s24, 1 }
   0x9   : > { %p1083_p4 = por %p1390_p1, %p43_p0  ;;  %p185_p7 = scmp.lt.s32.totalorder %s998_s24, 3 }
   0xa   : > { %p1088_p6 = por %p178_p3, %p43_p0  ;;  %s1000_s30 = smov [#allocation5]  }
   0xb   : > { %s1393_s27 = scalar_select %p1083_p4, 1, 0 }
   0xc   : > { %s1394_s28 = scalar_select %p1088_p6, 1, 0 }
   0xd   : > { %p1093_p8 = pnand %p753_p5, %p185_p7  ;;  %s203_s7 = sshll.u32 %s1000_s30, 4  ;;  %s1097_s7 = int_to_ptr.vmem [resolvable:$true] %s203_s7 }
   0xe   : > { %s1109_s9 = sadd.s32 1, %s998_s24   ;;  %s30_s10 = sadd.s32 1, %s994_s23 }
   0xf   : > { %s1395_s29 = scalar_select %p1093_p8, 1, 0 }
  0x10   : > { %p803_p9 = pneg %p1093_p8  ;;  %s27_s11 = ssub.s32 %s998_s24, %s1109_s9 }
  0x11   : > { %s870_s14 = scalar_lea.hbm %s1386_s3, 256 }
  0x12   : > { %p1104_p11 = pnand %p803_p9, %p1390_p1  ;;  %p871_p12 = scmp.ne.s32.totalorder %s1386_s3, %s870_s14 }
  0x13   : > { %p877_p5 = scmp.lt.u32.totalorder %s870_s14, %s1386_s3 }
  0x14   : > { %p872_p13 = pneg %p1104_p11 }
  0x16   : > { %p873_p0 = pnand %p872_p13, %p871_p12 }
  0x18   : > { %p874_p3 = pneg %p873_p0 }
  0x1a   : > { %p879_p7 = pnand %p877_p5, %p874_p3 }
  0x1c   : > { %882 = shalt.err (!%p879_p7)
}
  0x1d   : > { %s883_s19 = scalar_lea.vmem %s1097_s7, 256  ;;  %p891_p2 = scmp.lt.s32.totalorder %s1097_s7, %s1097_s7 }
  0x1e   : > { %p884_p9 = scmp.ne.s32.totalorder %s1097_s7, %s883_s19  ;;  %p892_p6 = scmp.lt.s32.totalorder %s883_s19, %s883_s19 }
  0x20   : > { %p886_p10 = pnand %p884_p9, %p872_p13  ;;  %p893_p4 = por %p892_p6, %p891_p2 }
  0x22   : > { %p887_p1 = pneg %p886_p10 }
  0x24   : > { %p894_p8 = pnand %p893_p4, %p887_p1 }
  0x26   : > { %897 = shalt.err (!%p894_p8)
}
  0x27   : > { %s1001_s20 = smov 128   ;;  %s1002_s26 = smov 8  }
  0x28   : > { %806 = dma.hbm_to_vmem [thread:$0]  (!%p1104_p11), %s1386_s3, 256, %s1097_s7, [#allocation6], %s1001_s20, %s1001_s20, %s1002_s26  }
  0x29   : > { %p28_p2 = scmp.eq.s32.totalorder %s27_s11, 0  ;;  %p37_p1 = scmp.ne.s32.totalorder %s994_s23, %s990_s22 }
  0x2a   : > { %p38_p4 = scmp.eq.s32.totalorder %s998_s24, 0  ;;  %p816_p6 = scmp.lt.s32.totalorder %s998_s24, 2 }
  0x2b   : > { %s1140_s13 = scalar_select %p28_p2, %s994_s23, %s30_s10  }
  0x2c   : > { %p39_p8 = por %p38_p4, %p37_p1  ;;  %p1397_p10 = scmp.eq.s32.totalorder %s1074_s25, 1 }
  0x2d   : > { %s223_s15 = sand.u32 1, %s994_s23   ;;  %s779_s16 = sshll.u32 %s998_s24, 7 }
  0x2e   : > { %p1144_p12 = por %p1397_p10, %p37_p1  ;;  %s756_s17 = sshll.u32 %s223_s15, 3 }
  0x2f   : > { %s1153_s19 = scalar_lea.hbm %s1383_s0, %s779_s16  ;;  %s227_s7 = scalar_lea.vmem [#allocation2], %s756_s17 }
  0x30   : > { %s235_s10 = sshll.u32 %s227_s7, 4  ;;  %p1155_p11 = pnand %p816_p6, %p39_p8  ;;  %s1159_s10 = int_to_ptr.vmem [resolvable:$true] %s235_s10 }
  0x31   : > { %s224_s20 = scalar_lea.sflag [#allocation3], %s223_s15  ;;  %s898_s26 = scalar_lea.hbm %s1153_s19, 128 }
  0x32   : > { %p899_p13 = scmp.ne.s32.totalorder %s1153_s19, %s898_s26  ;;  %p900_p0 = pneg %p1155_p11 }
  0x33   : > { %s903_s16 = scalar_lea.hbm %s1383_s0, 256  ;;  %p904_p7 = scmp.lt.u32.totalorder %s1153_s19, %s1383_s0 }
  0x34   : > { %p901_p3 = pnand %p900_p0, %p899_p13  ;;  %p905_p9 = scmp.lt.u32.totalorder %s903_s16, %s898_s26 }
  0x35   : > { %p907_p1 = scmp.lt.u32.totalorder %s898_s26, %s1153_s19 }
  0x36   : > { %p902_p5 = pneg %p901_p3  ;;  %p906_p2 = por %p905_p9, %p904_p7 }
  0x38   : > { %p908_p4 = por %p907_p1, %p906_p2 }
  0x3a   : > { %p909_p6 = pnand %p908_p4, %p902_p5 }
  0x3c   : > { %912 = shalt.err (!%p909_p6)
}
  0x3d   : > { %s913_s15 = scalar_lea.vmem %s1159_s10, 128  ;;  %s1003_s18 = smov [#allocation2]  }
  0x3e   : > { %p914_p8 = scmp.ne.s32.totalorder %s1159_s10, %s913_s15  ;;  %s918_s7 = sshll.u32 %s1003_s18, 4  ;;  %s919_s7 = int_to_ptr.vmem [resolvable:$false] %s918_s7 }
  0x3f   : > { %s920_s30 = scalar_lea.vmem %s919_s7, 256  ;;  %p921_p3 = scmp.lt.s32.totalorder %s1159_s10, %s919_s7 }
  0x40   : > { %p916_p10 = pnand %p914_p8, %p900_p0  ;;  %p922_p7 = scmp.lt.s32.totalorder %s920_s30, %s913_s15 }
  0x42   : > { %p917_p13 = pneg %p916_p10  ;;  %p923_p9 = por %p922_p7, %p921_p3 }
  0x44   : > { %p924_p2 = pnand %p923_p9, %p917_p13 }
  0x46   : > { %927 = shalt.err (!%p924_p2)
}
  0x47   : > { %810 = dma.hbm_to_vmem [thread:$0]  (!%p1155_p11), %s1153_s19, 128, %s1159_s10, %s224_s20  }
  0x48   : > { %p1400_p5 = scmp.ne.s32.totalorder %s1395_s29, 0 }
  0x49   : > { %s1189_s26 = sand.u32 (!%p1400_p5), 1, %s990_s22   ;;  %p1401_p0 = scmp.ne.s32.totalorder (!%p1400_p5), %s1393_s27, 0 }
  0x4a   : > { %244 = sbr.rel (%p1400_p5) target bundleno = 613 (0x265), region = 44  ;;  %s760_s12 = sshll.u32 (!%p1400_p5), %s1189_s26, 3 }
  0x4b   : > { %s247_s16 = scalar_lea.sflag (!%p1400_p5), [#allocation3], %s1189_s26  ;;  %s250_s17 = scalar_lea.vmem (!%p1400_p5), [#allocation2], %s760_s12 }
  0x51   : > { %973 = dma.done.wait (%p1401_p0), %s247_s16, 128  }
  0x52   : > { %975 = vsyncadd (%p1401_p0), %s247_s16, 4294967168  ;;  %p1402_p1 = scmp.eq.s32.totalorder %s1074_s25, 0 }
  0x54   : > { %977 = dma.done.wait (%p1402_p1), [#allocation6], 256   ;;  %p1403_p11 = pmov %p1402_p1 }
  0x55   : > { %v1004_v0 = vmov 0   ;;  %v286_v1 = vld [vmem:[%s1384_s1] sm:$0xf]  ;;  %v1005_v3 = vmov 839922192   ;;  %v294_v5 = vlaneseq  ;;  %s1006_s27 = smov 1  }
  0x56   : > { %979 = vsyncadd (%p1403_p11), [#allocation6], 4294967040  ;;  %867 = vset.pattern.permute.xlu0 %v1004_v0  ;;  %868 = vset.pattern.permute.xlu1 %v1004_v0  ;;  %v300_v2 = vld [vmem:[%s1385_s2] sm:$0xf]  ;;  %v292_v4 = vunpack.c.l.s4 %v1005_v3  ;;  %s1007_s20 = smov 16   ;;  %s1008_s8 = smov 17  }
  0x57   : > { %289 = vperm.xlu0 %867, %v286_v1   ;;  %v295_v7 = vshrl.u32 %v294_v5, 7  ;;  %v1207_v11 = vld [vmem:[%s250_s17] sm:$0xff]  ;;  %s1009_s15 = smov 15   ;;  %s1010_s18 = smov 127   ;;  %v1014_v19 = vmov 0.0   ;;  %v1240_v21 = vand.u32 127, %v294_v5 }
  0x58   : > { %v293_v6 = vunpack.c.0.s8 %v292_v4  ;;  %s1011_s7 = smov 112   ;;  %s1012_s30 = smov 113   ;;  %v530_v18 = vld [vmem:[%s1387_s4] sm:$0xff]  ;;  %619 = vmatprep.mubr.f32.mxu0 %v1014_v19  ;;  %625 = vmatprep.mubr.f32.mxu1 %v1014_v19  ;;  %v531_v20 = vld [vmem:[%s1387_s4 + $0x8] sm:$0xf]  ;;  %vm519_vm4 = vcmask 1043456  }
  0x59   : > { %s1013_s12 = smov 111   ;;  %v1242_v22 = vsub.s32 0, %v295_v7  ;;  %v1244_v23 = vsub.s32 1, %v295_v7  ;;  %v763_v24 = vld [vmem:[%s1388_s5 + $0x1] ss:$8 sm:$0x3] }
  0x5a   : > { %v296_v8 = vsub.s32 %v293_v6, %v295_v7  ;;  %vm345_vm0 = vcmp.lt.s32.totalorder %v1240_v21, 16  ;;  %v765_v29 = vld [vmem:[%s1388_s5 + $0x3] ss:$8 sm:$0x3]  ;;  %vm389_vm1 = vcmp.lt.s32.totalorder %v1240_v21, 1  ;;  %vm324_vm2 = vcmp.lt.s32.totalorder %v1240_v21, 17 }
  0x5b   : > { %303 = vperm.xlu0 %867, %v300_v2   ;;  %v354_v27 = vrot.slane %v763_v24, %v1242_v22  ;;  %v358_v28 = vrot.slane %v763_v24, %v1244_v23  ;;  %v398_v36 = vrot.slane %v765_v29, %v1242_v22  ;;  %v402_v37 = vrot.slane %v765_v29, %v1244_v23  ;;  %v327_v38 = vld [vmem:[%s1388_s5] ss:$8 sm:$0x3]  ;;  %v764_v47 = vld [vmem:[%s1388_s5 + $0x2] ss:$8 sm:$0x3] }
  0x5c   : > { %v332_v45 = vrot.slane %v327_v38, %v1242_v22  ;;  %v336_v46 = vrot.slane %v327_v38, %v1244_v23  ;;  %vm367_vm3 = vcmp.lt.s32.totalorder %v1240_v21, 15  ;;  %v376_v51 = vrot.slane %v764_v47, %v1242_v22  ;;  %v766_v58 = vld [vmem:[%s1388_s5 + $0x5] ss:$8 sm:$0x3]  ;;  %s1015_s29 = smov [#allocation7]  }
  0x5d   : > { %v380_v52 = vrot.slane %v764_v47, %v1244_v23  ;;  %vm411_vm5 = vcmp.lt.s32.totalorder %v1240_v21, 127  ;;  %v420_v0 = vrot.slane %v766_v58, %v1242_v22  ;;  %v424_v1 = vrot.slane %v766_v58, %v1244_v23  ;;  %v768_v6 = vld [vmem:[%s1388_s5 + $0x7] ss:$8 sm:$0x3]  ;;  %s932_s19 = sshll.u32 %s1015_s29, 4  ;;  %s933_s19 = int_to_ptr.vmem [resolvable:$false] %s932_s19 }
  0x5e   : > { %vm455_vm6 = vcmp.lt.s32.totalorder %v1240_v21, 112  ;;  %v468_v24 = vrot.slane %v768_v6, %v1244_v23  ;;  %vm433_vm7 = vcmp.lt.s32.totalorder %v1240_v21, 113  ;;  %vm477_vm8 = vcmp.lt.s32.totalorder %v1240_v21, 111  ;;  %s934_s10 = scalar_lea.vmem %s933_s19, 1024 }
  0x5f   : > { %vm542_vm9 = vcmask 293888  }
  0xd6   : > { %v290_v9 = vpop.permute.xlu0 %289 }
  0xd7   : > { %v297_v10 = vrot.slane %v290_v9, %v296_v8 }
  0xd9   : > { %v299_v13 = vmul.f32 %v297_v10, %v1207_v11 }
  0xda   : > { %v304_v12 = vpop.permute.xlu0 %303 }
  0xdb   : > { %v311_v14 = vrot.slane %v304_v12, %v296_v8 }
  0xdd   : > { %v313_v15 = vadd.f32 %v311_v14, %v299_v13 }
  0xdf   : > { %v1210_v16 = vmax.f32 %v313_v15, 0.0 }
  0xe1   : > { %385 = vrot.lane.b32.xlu0 %v1210_v16, %s1006_s27  ;;  %341 = vrot.lane.b32.xlu1 %v1210_v16, %s1007_s20  ;;  %v1217_v17 = vcombine.high %v1210_v16, %v1210_v16 }
  0xe5   : > { %318 = vrot.lane.b32.xlu0 %v1210_v16, %s1008_s8  ;;  %343 = vrot.lane.b32.xlu1 %v1217_v17, %s1007_s20 }
  0xe9   : > { %363 = vrot.lane.b32.xlu0 %v1210_v16, %s1009_s15  ;;  %387 = vrot.lane.b32.xlu1 %v1217_v17, %s1006_s27 }
  0xed   : > { %407 = vrot.lane.b32.xlu0 %v1210_v16, %s1010_s18  ;;  %320 = vrot.lane.b32.xlu1 %v1217_v17, %s1008_s8  ;;  %s762_s8 = sshll.u32 %s1189_s26, 5 }
  0xf1   : > { %451 = vrot.lane.b32.xlu0 %v1210_v16, %s1011_s7  ;;  %365 = vrot.lane.b32.xlu1 %v1217_v17, %s1009_s15  ;;  %s282_s15 = scalar_lea.vmem [#allocation7], %s762_s8 }
  0xf5   : > { %429 = vrot.lane.b32.xlu0 %v1210_v16, %s1012_s30  ;;  %409 = vrot.lane.b32.xlu1 %v1217_v17, %s1010_s18  ;;  %s669_s18 = sshll.u32 %s282_s15, 4  ;;  %s1328_s18 = int_to_ptr.vmem [resolvable:$true] %s669_s18 }
  0xf6   : > { %s928_s17 = scalar_lea.vmem %s1328_s18, 512  ;;  %p935_p10 = scmp.lt.s32.totalorder %s1328_s18, %s933_s19 }
  0xf7   : > { %p929_p4 = scmp.ne.s32.totalorder %s1328_s18, %s928_s17  ;;  %p936_p13 = scmp.lt.s32.totalorder %s934_s10, %s928_s17 }
  0xf9   : > { %473 = vrot.lane.b32.xlu0 %v1210_v16, %s1013_s12  ;;  %453 = vrot.lane.b32.xlu1 %v1217_v17, %s1011_s7  ;;  %s780_s7 = sshll.u32 %s1074_s25, 8  ;;  %s656_s25 = scalar_lea.sflag [#allocation4], %s1189_s26 }
  0xfa   : > { %s1333_s16 = scalar_lea.hbm %s1389_s6, %s780_s7  ;;  %p930_p6 = pnand %p929_p4, %p1144_p12 }
  0xfb   : > { %p937_p3 = por %p936_p13, %p935_p10 }
  0xfc   : > { %p931_p8 = pneg %p930_p6 }
  0xfd   : > { %534 = vperm.xlu0 %867, %v530_v18   ;;  %431 = vrot.lane.b32.xlu1 %v1217_v17, %s1012_s30 }
  0xfe   : > { %p938_p7 = pnand %p937_p3, %p931_p8 }
 0x101   : > { %475 = vrot.lane.b32.xlu1 %v1217_v17, %s1013_s12 }
 0x105   : > { %539 = vperm.xlu1 %868, %v531_v20   ;;  %v464_v20 = vrot.slane %v768_v6, %v1242_v22 }
 0x153   : > { %v386_v25 = vpop.permute.xlu0 %385  ;;  %v342_v26 = vpop.permute.xlu1 %341 }
 0x157   : > { %v319_v30 = vpop.permute.xlu0 %318  ;;  %v344_v31 = vpop.permute.xlu1 %343 }
 0x158   : > { %v346_v32 = vsel %vm345_vm0, %v342_v26, %v344_v31  ;;  %v347_v33 = vsel %vm345_vm0, %v344_v31, %v342_v26 }
 0x159   : > { %v361_v34 = vmul.f32 %v354_v27, %v347_v33  ;;  %v362_v35 = vmul.f32 %v358_v28, %v346_v32 }
 0x15b   : > { %v364_v39 = vpop.permute.xlu0 %363  ;;  %v388_v40 = vpop.permute.xlu1 %387  ;;  %v497_v53 = vrot.slane %v361_v34, 4  ;;  %v498_v54 = vrot.slane %v362_v35, 4  ;;  %v769_v34 = vld [vmem:[%s1388_s5 + $0x10] ss:$8 sm:$0x3] }
 0x15c   : > { %v390_v41 = vsel %vm389_vm1, %v386_v25, %v388_v40  ;;  %v391_v42 = vsel %vm389_vm1, %v388_v40, %v386_v25  ;;  %v767_v25 = vld [vmem:[%s1388_s5 + $0x6] ss:$8 sm:$0x3]  ;;  %v486_v40 = vrot.slane %v769_v34, %v1242_v22 }
 0x15d   : > { %v405_v43 = vmul.f32 %v398_v36, %v391_v42  ;;  %v406_v44 = vmul.f32 %v402_v37, %v390_v41  ;;  %v442_v32 = vrot.slane %v767_v25, %v1242_v22  ;;  %v446_v33 = vrot.slane %v767_v25, %v1244_v23 }
 0x15e   : > { %v490_v41 = vrot.slane %v769_v34, %v1244_v23 }
 0x15f   : > { %v321_v48 = vpop.permute.xlu1 %320  ;;  %v408_v55 = vpop.permute.xlu0 %407  ;;  %v503_v2 = vrot.slane %v405_v43, 4  ;;  %v504_v3 = vrot.slane %v406_v44, 4 }
 0x160   : > { %v325_v49 = vsel %vm324_vm2, %v319_v30, %v321_v48  ;;  %v326_v50 = vsel %vm324_vm2, %v321_v48, %v319_v30 }
 0x161   : > { %v339_v56 = vmul.f32 %v332_v45, %v326_v50  ;;  %v340_v57 = vmul.f32 %v336_v46, %v325_v49 }
 0x163   : > { %v366_v59 = vpop.permute.xlu1 %365  ;;  %v521_v60 = vsel %vm519_vm4, %v340_v57, %v498_v54  ;;  %v520_v61 = vsel %vm519_vm4, %v339_v56, %v497_v53  ;;  %v452_v7 = vpop.permute.xlu0 %451 }
 0x164   : > { %v368_v62 = vsel %vm367_vm3, %v364_v39, %v366_v59  ;;  %v369_v63 = vsel %vm367_vm3, %v366_v59, %v364_v39 }
 0x165   : > { %v383_v4 = vmul.f32 %v376_v51, %v369_v63  ;;  %v384_v5 = vmul.f32 %v380_v52, %v368_v62  ;;  %v633_v63 = vcombine.high %v1207_v11, %v1207_v11 }
 0x167   : > { %v410_v8 = vpop.permute.xlu1 %409  ;;  %v523_v9 = vsel %vm519_vm4, %v384_v5, %v504_v3  ;;  %v522_v10 = vsel %vm519_vm4, %v383_v4, %v503_v2  ;;  %v430_v29 = vpop.permute.xlu0 %429 }
 0x168   : > { %v412_v12 = vsel %vm411_vm5, %v408_v55, %v410_v8  ;;  %v413_v13 = vsel %vm411_vm5, %v410_v8, %v408_v55  ;;  %v781_v14 = vpack.c.bf16 %v523_v9, %v521_v60  ;;  %v783_v15 = vpack.c.bf16 %v522_v10, %v520_v61 }
 0x169   : > { %v427_v18 = vmul.f32 %v420_v0, %v412_v12  ;;  %v428_v19 = vmul.f32 %v424_v1, %v413_v13 }
 0x16a   : > { %782 = vmatprep.subr.bf16.mxu0 %v781_v14  ;;  %789 = vmatprep.subr.bf16.mxu1 %v781_v14 }
 0x16b   : > { %784 = vmatpush1.bf16.msra.mxu0 %v783_v15  ;;  %792 = vmatpush1.bf16.msra.mxu1 %v783_v15  ;;  %v454_v26 = vpop.permute.xlu1 %453  ;;  %v509_v35 = vrot.slane %v427_v18, 4  ;;  %v510_v36 = vrot.slane %v428_v19, 4  ;;  %v474_v46 = vpop.permute.xlu0 %473 }
 0x16c   : > { %v456_v27 = vsel %vm455_vm6, %v452_v7, %v454_v26  ;;  %v457_v28 = vsel %vm455_vm6, %v454_v26, %v452_v7 }
 0x16d   : > { %v471_v30 = vmul.f32 %v464_v20, %v456_v27  ;;  %v472_v31 = vmul.f32 %v468_v24, %v457_v28  ;;  %v525_v48 = vsel %vm519_vm4, %v1217_v17, %v510_v36  ;;  %v524_v50 = vsel %vm519_vm4, %v1210_v16, %v509_v35  ;;  %v528_v16 = vld [vmem:[#allocation5] sm:$0xff]  ;;  %v529_v17 = vld [vmem:[#allocation5 + $0x8] sm:$0xf] }
 0x16f   : > { %v432_v37 = vpop.permute.xlu1 %431  ;;  %v515_v42 = vrot.slane %v471_v30, 4  ;;  %v516_v43 = vrot.slane %v472_v31, 4 }
 0x170   : > { %v434_v38 = vsel %vm433_vm7, %v430_v29, %v432_v37  ;;  %v435_v39 = vsel %vm433_vm7, %v432_v37, %v430_v29 }
 0x171   : > { %v449_v44 = vmul.f32 %v442_v32, %v434_v38  ;;  %v450_v45 = vmul.f32 %v446_v33, %v435_v39 }
 0x173   : > { %v476_v47 = vpop.permute.xlu1 %475  ;;  %v527_v49 = vsel %vm519_vm4, %v450_v45, %v516_v43  ;;  %v526_v51 = vsel %vm519_vm4, %v449_v44, %v515_v42 }
 0x174   : > { %v478_v22 = vsel %vm477_vm8, %v474_v46, %v476_v47  ;;  %v479_v23 = vsel %vm477_vm8, %v476_v47, %v474_v46  ;;  %v785_v52 = vpack.c.bf16 %v527_v49, %v525_v48  ;;  %v787_v53 = vpack.c.bf16 %v526_v51, %v524_v50 }
 0x175   : > { %v493_v54 = vmul.f32 %v486_v40, %v478_v22  ;;  %v494_v55 = vmul.f32 %v490_v41, %v479_v23 }
 0x176   : > { %786 = vmatprep.subr.bf16.mxu0 %v785_v52  ;;  %790 = vmatprep.subr.bf16.mxu1 %v785_v52 }
 0x177   : > { %788 = vmatpush1.bf16.msra.mxu0 %v787_v53  ;;  %793 = vmatpush1.bf16.msra.mxu1 %v787_v53 }
 0x178   : > { %770 = vmatprep.subr.msk.mxu0 %vm519_vm4, %v494_v55  ;;  %791 = vmatprep.subr.msk.mxu1 %vm519_vm4, %v494_v55 }
 0x17b   : > { %771 = vmatpush1.msk.msra.mxu0 %vm519_vm4, %v493_v54  ;;  %794 = vmatpush1.msk.msra.mxu1 %vm519_vm4, %v493_v54 }
 0x17c   : > { %772 = vmatmul.mubr.msk.f32.vlgmr.msra.gmra.mrb[0].mxu0 %vm542_vm9, %v528_v16  ;;  %773 = vmatmul.mubr.msk.f32.vlgmr.msra.gmra.mrb[0].mxu1 %vm542_vm9, %v529_v17  ;;  %v535_v56 = vpop.permute.xlu0 %534 }
 0x184   : > { %v540_v21 = vpop.permute.xlu1 %539 }
 0x24f   : > { %v621_v57 = vpop.f32.mrb[0].mxu0  ;;  %v627_v58 = vpop.f32.mrb[0].mxu1 }
 0x250   : > { %v622_v59 = vadd.f32 %v621_v57, %v535_v56  ;;  %v628_v60 = vadd.f32 %v627_v58, %v540_v21  ;;  %v623_v61 = vpop.f32.mrb[1].mxu0  ;;  %v629_v62 = vpop.f32.mrb[1].mxu1 }
 0x251   : > { %v624_v0 = vadd.f32 %v623_v61, %v535_v56  ;;  %v630_v1 = vadd.f32 %v629_v62, %v540_v21 }
 0x252   : > { %v639_v2 = vrot.slane %v622_v59, 4  ;;  %v641_v3 = vrot.slane %v628_v60, 4 }
 0x253   : > { %v640_v4 = vrot.slane %v624_v0, 4  ;;  %v643_v5 = vrot.slane %v630_v1, 4 }
 0x254   : > { %v649_v6 = vsel %vm519_vm4, %v1207_v11, %v639_v2  ;;  %v642_v7 = vsel %vm519_vm4, %v639_v2, %v641_v3 }
 0x255   : > { %651 = vst [vmem:[%s282_s15] sm:$0xff] %v649_v6  ;;  %653 = vst [vmem:[%s282_s15 + $0x10] sm:$0xff] %v642_v7  ;;  %v650_v8 = vsel %vm519_vm4, %v633_v63, %v640_v4  ;;  %v644_v9 = vsel %vm519_vm4, %v640_v4, %v643_v5 }
 0x256   : > { %652 = vst [vmem:[%s282_s15 + $0x8] sm:$0xff] %v650_v8  ;;  %654 = vst [vmem:[%s282_s15 + $0x18] sm:$0xff] %v644_v9 }
 0x257   : > { %941 = shalt.err (!%p938_p7)
}
 0x258   : > { %s942_s11 = scalar_lea.hbm %s1333_s16, 512  ;;  %s946_s15 = scalar_lea.hbm %s1389_s6, 1024 }
 0x259   : > { %p943_p9 = scmp.ne.s32.totalorder %s1333_s16, %s942_s11  ;;  %p947_p0 = scmp.lt.u32.totalorder %s1333_s16, %s1389_s6 }
 0x25a   : > { %p948_p1 = scmp.lt.u32.totalorder %s946_s15, %s942_s11  ;;  %p950_p4 = scmp.lt.u32.totalorder %s942_s11, %s1333_s16 }
 0x25b   : > { %p944_p2 = pnand %p943_p9, %p1144_p12 }
 0x25c   : > { %p949_p11 = por %p948_p1, %p947_p0 }
 0x25d   : > { %p945_p5 = pneg %p944_p2 }
 0x25e   : > { %p951_p6 = por %p950_p4, %p949_p11 }
 0x260   : > { %p952_p8 = pnand %p951_p6, %p945_p5 }
 0x262   : > { %955 = shalt.err (!%p952_p8)
}
 0x263   : > { %s1016_s12 = smov 256   ;;  %s1017_s17 = smov 512  }
 0x264   : > { %801 = dma.vmem_to_hbm [thread:$0]  (%p1144_p12), %s1328_s18, 512, %s1333_s16, %s656_s25, %s1016_s12, %s1017_s17, %s1007_s20  }
 0x265 PF: > { %s684_s29 = sand.u32 1, %s986_s21   ;;  %p1404_p10 = scmp.ne.s32.totalorder %s1394_s28, 0 }
 0x266   : > { %p1405_p13 = scmp.ge.s32.totalorder %s998_s24, 2  ;;  %s685_s19 = scalar_lea.sflag [#allocation4], %s684_s29 }
 0x268   : > { %p812_p3 = pnand %p1405_p13, %p1404_p10 }
 0x26a   : > { %981 = dma.done.wait (!%p812_p3), %s685_s19, 512  }
 0x26b   : > { %983 = vsyncadd (!%p812_p3), %s685_s19, 4294966784  ;;  %p20_p7 = scmp.ge.s32.totalorder %s1109_s9, 4   ;;  %s1406_s21 = smov %s990_s22 }
 0x26c   : > { %s1407_s22 = smov %s994_s23  ;;  %s1408_s23 = smov %s1140_s13 }
 0x26d   : > { %s1409_s24 = smov %s1109_s9  ;;  %22 = sbr.rel (!%p20_p7) target bundleno = 6 (0x6), region = 100 }
 0x274   :  { %690 = vsyncpa [#allocation3], 1 }
 0x275   :  { %692 = vsyncpa [#allocation3 + $0x1], 1 }
 0x276   :  { %693 = vsyncpa [#allocation6], 1 }
 0x277   :  { %694 = vsyncpa [#allocation4], 1 }
 0x278   :  { %696 = vsyncpa [#allocation4 + $0x1], 1 }

</bundles_post_ra>
